<compile_context>
chip_gen: v7x
topology: tpu7x:2x2x1
jax: 0.10.0
libtpu: 0.0.40
codegen_flags: <defaults>
</compile_context>

<pallas_src>
import jax
import jax.numpy as jnp
import numpy as np
from jax.experimental import pallas as pl
from jax.experimental.pallas import tpu as pltpu


# ----------------------------- helpers ---------------------------------------

def _round_up(x, m):
    return ((x + m - 1) // m) * m


def _vmem_limit_bytes():
    """Scoped-VMEM request: ~3/4 of physical VMEM (128 MiB v5e/v6e, 64 MiB v7x)."""
    cap = 64 * 1024 * 1024          # conservative fallback (v7x per-TC physical)
    try:
        cap = int(getattr(pltpu.get_tpu_info(), "vmem_capacity_bytes", cap))
    except Exception:
        pass
    return (cap * 3) // 4


def _pick_tk(B, Hp, Dwp, Kp, vmem_limit, max_tile_k):
    """Largest 128-multiple w1 row-tile that divides Hp and fits the VMEM budget."""
    Bp = max(B, 8)
    # Bytes independent of t_k: resident (double-buffered) w2/w3/biases,
    # f32 accumulator scratch, output block.
    fixed = (2 * Hp * Dwp * 2
             + 2 * Dwp * Kp * 2
             + 2 * 8 * (Hp + Dwp + Kp) * 4
             + Bp * Hp * 4
             + 2 * Bp * Kp * 4)
    per_row = 2 * (Hp * 2 + Bp * 2)          # one w1 row + one x chunk, 2 buffers
    budget = int(vmem_limit * 0.7) - fixed
    cap = budget // per_row if budget > 0 else 128
    cap = max(128, min(cap, max_tile_k, Hp))
    t = (cap // 128) * 128
    while t > 128 and Hp % t != 0:
        t -= 128
    return max(t, 128)


def _flatten_input(vs, frameaxis_data, sentence_prediction_method):
    if sentence_prediction_method == "custom":
        vs = jnp.concatenate([vs, frameaxis_data], axis=-1)
    return vs.reshape(vs.shape[0], -1)          # nn.Flatten(start_dim=1)


# ----------------------------- Pallas kernel ----------------------------------

def _mlp_fused_kernel(x_ref, w1_ref, b1_ref, w2_ref, b2_ref, w3_ref, b3_ref,
                      y_ref, acc_ref):
    """y = relu(relu(x @ w1' + b1') @ w2 + b2) @ w3 + b3.

    Grid = (Hp // t_k,) over layer-1's reduction axis.  Each step streams a
    contiguous (t_k, Hp) bf16 block of w1 and the matching (B, t_k) x block,
    accumulating into a resident (B, Hp) f32 scratch.  Layers 2+3 run in the
    last-step finalize with w2/w3 resident in VMEM (no h1 HBM round-trip).
    """
    k = pl.program_id(0)

    @pl.when(k == 0)
    def _init():
        acc_ref[...] = jnp.zeros_like(acc_ref)

    acc_ref[...] += jnp.dot(x_ref[...], w1_ref[...],
                            preferred_element_type=jnp.float32)

    @pl.when(k == pl.num_programs(0) - 1)
    def _finalize():
        h1 = jnp.maximum(acc_ref[...] + b1_ref[...], 0.0).astype(w2_ref.dtype)
        h2 = jnp.dot(h1, w2_ref[...], preferred_element_type=jnp.float32)
        h2 = jnp.maximum(h2 + b2_ref[...], 0.0).astype(w3_ref.dtype)
        y = jnp.dot(h2, w3_ref[...], preferred_element_type=jnp.float32)
        y_ref[...] = y + b3_ref[...]


# ----------------------------- one-time weight prep ---------------------------

def prepare_supervised_weights(params, eps=1e-5):
    """ONE-TIME init: fold eval-mode BatchNorm into Linear-1, cast weights to
    bf16, pad to lane (128) multiples.  Cache the result; never call per
    forward (avoids 2-3x redundant HBM passes over the weights)."""
    H = params["w1"].shape[0]
    Dw, K = params["w3"].shape
    Hp, Dwp, Kp = _round_up(H, 128), _round_up(Dw, 128), _round_up(K, 128)

    scale = params["bn_gamma"] * jax.lax.rsqrt(params["bn_var"] + eps)   # (1, H)
    w1 = (params["w1"] * scale).astype(jnp.bfloat16)
    b1 = (params["b1"] - params["bn_mean"]) * scale + params["bn_beta"]

    def pad2(a, r, c):
        return jnp.pad(a, ((0, r - a.shape[0]), (0, c - a.shape[1])))

    return {
        "w1": pad2(w1, Hp, Hp),
        "b1": pad2(b1.astype(jnp.float32), 1, Hp),
        "w2": pad2(params["w2"].astype(jnp.bfloat16), Hp, Dwp),
        "b2": pad2(params["b2"].astype(jnp.float32), 1, Dwp),
        "w3": pad2(params["w3"].astype(jnp.bfloat16), Dwp, Kp),
        "b3": pad2(params["b3"].astype(jnp.float32), 1, Kp),
    }


# ----------------------------- forward ----------------------------------------

def _supervised_forward(x, prep, num_frames, max_tile_k=2048):
    """feed_forward_sentence(x) via one fused, pipelined Pallas kernel."""
    B, H = x.shape
    Hp = prep["w1"].shape[0]
    Dwp, Kp = prep["w3"].shape

    vmem_limit = _vmem_limit_bytes()
    t_k = _pick_tk(B, Hp, Dwp, Kp, vmem_limit, max_tile_k)
    n_k = Hp // t_k

    # Activation padding only (weights are already padded at init).
    x_p = jnp.pad(x.astype(jnp.bfloat16), ((0, 0), (0, Hp - H)))

    flops = 2 * B * (Hp * Hp + Hp * Dwp + Dwp * Kp)
    bytes_accessed = (2 * (Hp * Hp + Hp * Dwp + Dwp * Kp)     # bf16 weights
                      + 4 * (Hp + Dwp + Kp)                   # f32 biases
                      + 2 * B * Hp + 4 * B * Kp)              # x in, y out

    y_p = pl.pallas_call(
        _mlp_fused_kernel,
        out_shape=jax.ShapeDtypeStruct((B, Kp), jnp.float32),
        grid_spec=pltpu.PrefetchScalarGridSpec(
            num_scalar_prefetch=0,
            grid=(n_k,),                                       # reduction only
            in_specs=[
                pl.BlockSpec((B, t_k), lambda k: (0, k)),      # stream x chunks
                pl.BlockSpec((t_k, Hp), lambda k: (k, 0)),     # stream w1: contiguous rows
                pl.BlockSpec((1, Hp), lambda k: (0, 0)),       # b1 resident
                pl.BlockSpec((Hp, Dwp), lambda k: (0, 0)),     # w2 resident
                pl.BlockSpec((1, Dwp), lambda k: (0, 0)),      # b2 resident
                pl.BlockSpec((Dwp, Kp), lambda k: (0, 0)),     # w3 resident
                pl.BlockSpec((1, Kp), lambda k: (0, 0)),       # b3 resident
            ],
            out_specs=pl.BlockSpec((B, Kp), lambda k: (0, 0)), # lane-dense output
            scratch_shapes=[pltpu.VMEM((B, Hp), jnp.float32)], # resident f32 acc
        ),
        compiler_params=pltpu.CompilerParams(
            dimension_semantics=("arbitrary",),
            vmem_limit_bytes=vmem_limit,
        ),
        cost_estimate=pl.CostEstimate(
            flops=flops, transcendentals=0, bytes_accessed=bytes_accessed),
    )(x_p, prep["w1"], prep["b1"], prep["w2"], prep["b2"],
      prep["w3"], prep["b3"])

    return y_p[:, :num_frames]


def muse_supervised(d_p, d_a0, d_a1, d_fx, vs, frameaxis_data, prep,
                    sentence_prediction_method="friss", max_tile_k=2048):
    """Forward pass matching MuSESupervised.forward (eval mode). `prep` is the
    cached output of prepare_supervised_weights (hoisted out of the forward)."""
    f32 = jnp.float32
    # Unsupervised branch: tiny memory-bound reductions kept in plain JAX.
    d_p_mean = jnp.mean(d_p.astype(f32), axis=(1, 2))
    d_a0_mean = jnp.mean(d_a0.astype(f32), axis=(1, 2))
    d_a1_mean = jnp.mean(d_a1.astype(f32), axis=(1, 2))
    d_fx_mean = jnp.mean(d_fx.astype(f32), axis=1)
    y_hat_u = (d_p_mean + d_a0_mean + d_a1_mean + d_fx_mean) * 0.25

    x = _flatten_input(vs, frameaxis_data, sentence_prediction_method)
    num_frames = d_fx.shape[-1]                      # static K
    y_hat_s = _supervised_forward(x, prep, num_frames, max_tile_k=max_tile_k)

    combined = y_hat_u + y_hat_s
    other = {"predicate": d_p_mean, "arg0": d_a0_mean,
             "arg1": d_a1_mean, "frameaxis": d_fx_mean}
    return y_hat_u, y_hat_s, combined, other


# ----------------------------- params & references ----------------------------

def make_params(key, D_w, K, num_sentences, frameaxis_dim,
                sentence_prediction_method="friss"):
    D_h = D_w + (frameaxis_dim if sentence_prediction_method == "custom" else 0)
    H = D_h * num_sentences
    ks = jax.random.split(key, 10)
    return {
        "w1": jax.random.normal(ks[0], (H, H), jnp.float32) * 0.02,
        "b1": jax.random.normal(ks[1], (1, H), jnp.float32) * 0.02,
        "bn_gamma": 1.0 + 0.1 * jax.random.normal(ks[2], (1, H), jnp.float32),
        "bn_beta": 0.1 * jax.random.normal(ks[3], (1, H), jnp.float32),
        "bn_mean": 0.1 * jax.random.normal(ks[4], (1, H), jnp.float32),
        "bn_var": jax.random.uniform(ks[5], (1, H), jnp.float32, 0.5, 1.5),
        "w2": jax.random.normal(ks[6], (H, D_w), jnp.float32) * 0.02,
        "b2": jax.random.normal(ks[7], (1, D_w), jnp.float32) * 0.02,
        "w3": jax.random.normal(ks[8], (D_w, K), jnp.float32) * 0.02,
        "b3": jax.random.normal(ks[9], (1, K), jnp.float32) * 0.02,
    }


def reference_supervised_prepared(x, prep, num_frames):
    """Mirror of the kernel math (bf16 weights/activations, f32 accumulate)."""
    Hp = prep["w1"].shape[0]
    x_p = jnp.pad(x.astype(jnp.bfloat16), ((0, 0), (0, Hp - x.shape[1])))
    h = jnp.dot(x_p, prep["w1"], preferred_element_type=jnp.float32) + prep["b1"]
    h = jnp.maximum(h, 0.0).astype(jnp.bfloat16)
    h = jnp.dot(h, prep["w2"], preferred_element_type=jnp.float32) + prep["b2"]
    h = jnp.maximum(h, 0.0).astype(jnp.bfloat16)
    y = jnp.dot(h, prep["w3"], preferred_element_type=jnp.float32) + prep["b3"]
    return y[:, :num_frames]


def reference_forward_f32(d_p, d_a0, d_a1, d_fx, vs, frameaxis_data, params,
                          sentence_prediction_method="friss"):
    """Pure-f32 eval-mode math exactly as the original torch module."""
    d_p_mean = jnp.mean(jnp.mean(d_p, axis=2), axis=1)
    d_a0_mean = jnp.mean(jnp.mean(d_a0, axis=2), axis=1)
    d_a1_mean = jnp.mean(jnp.mean(d_a1, axis=2), axis=1)
    d_fx_mean = jnp.mean(d_fx, axis=1)
    y_hat_u = (d_p_mean + d_a0_mean + d_a1_mean + d_fx_mean) / 4
    x = _flatten_input(vs, frameaxis_data, sentence_prediction_method)
    h = x @ params["w1"] + params["b1"]
    h = (h - params["bn_mean"]) / jnp.sqrt(params["bn_var"] + 1e-5)
    h = h * params["bn_gamma"] + params["bn_beta"]
    h = jnp.maximum(h, 0.0)
    h = jnp.maximum(h @ params["w2"] + params["b2"], 0.0)
    y_hat_s = h @ params["w3"] + params["b3"]
    return y_hat_u, y_hat_s, y_hat_u + y_hat_s


# ----------------------------- test harness -----------------------------------

def _run_config(seed, B, S, A, D_w, K, frameaxis_dim, method, max_tile_k):
    key = jax.random.PRNGKey(seed)
    k_dp, k_da0, k_da1, k_dfx, k_vs, k_fa, k_p = jax.random.split(key, 7)
    d_p = jax.random.normal(k_dp, (B, S, A, K), jnp.float32)
    d_a0 = jax.random.normal(k_da0, (B, S, A, K), jnp.float32)
    d_a1 = jax.random.normal(k_da1, (B, S, A, K), jnp.float32)
    d_fx = jax.random.normal(k_dfx, (B, S, K), jnp.float32)
    vs = jax.random.normal(k_vs, (B, S, D_w), jnp.float32)
    fa = jax.random.normal(k_fa, (B, S, frameaxis_dim), jnp.float32)
    params = make_params(k_p, D_w, K, S, frameaxis_dim, method)

    # One-time weight prep (hoisted out of the forward path).
    prep = jax.tree_util.tree_map(jnp.asarray, prepare_supervised_weights(params))
    jax.block_until_ready(prep)

    run = jax.jit(muse_supervised,
                  static_argnames=("sentence_prediction_method", "max_tile_k"))
    y_u, y_s, comb, other = run(d_p, d_a0, d_a1, d_fx, vs, fa, prep,
                                sentence_prediction_method=method,
                                max_tile_k=max_tile_k)
    jax.block_until_ready((y_u, y_s, comb, other))

    # Tight check vs a reference that mirrors the kernel math (bf16 weights).
    x = _flatten_input(vs, fa, method)
    s_ref = reference_supervised_prepared(x, prep, K)
    u_ref, s_ref_f32, _ = reference_forward_f32(
        d_p, d_a0, d_a1, d_fx, vs, fa, params, method)

    np.testing.assert_allclose(np.asarray(y_u), np.asarray(u_ref),
                               rtol=1e-5, atol=1e-5)
    np.testing.assert_allclose(np.asarray(y_s), np.asarray(s_ref),
                               rtol=1e-4, atol=1e-4)
    np.testing.assert_allclose(np.asarray(comb), np.asarray(u_ref + s_ref),
                               rtol=1e-4, atol=1e-4)
    np.testing.assert_allclose(np.asarray(other["predicate"]),
                               np.asarray(jnp.mean(d_p, axis=(1, 2))),
                               rtol=1e-5, atol=1e-5)
    # Loose check vs the original full-f32 eval-mode semantics (bf16 weight
    # storage is the only deviation).
    np.testing.assert_allclose(np.asarray(y_s), np.asarray(s_ref_f32),
                               rtol=5e-2, atol=5e-2)


if __name__ == "__main__":
    # Config 1: friss path, H = D_w * S = 128 (single reduction tile).
    _run_config(seed=0, B=2, S=8, A=4, D_w=16, K=8, frameaxis_dim=4,
                method="friss", max_tile_k=2048)
    # Config 2: custom path, H = (D_w + frameaxis_dim) * S = 288 (padded to
    # 384); force t_k=128 to exercise the multi-step streaming reduction and
    # the padded lanes.
    _run_config(seed=1, B=2, S=8, A=4, D_w=32, K=8, frameaxis_dim=4,
                method="custom", max_tile_k=128)

    print("KERNEL_OK")
</pallas_src>

<mosaic_0001>
module attributes {stable_mosaic.version = 11 : i64} {
  func.func @_mlp_fused_kernel(%arg0: i32, %arg1: memref<2x128xbf16, #tpu.memory_space<vmem>>, %arg2: memref<128x128xbf16, #tpu.memory_space<vmem>>, %arg3: memref<1x128xf32, #tpu.memory_space<vmem>>, %arg4: memref<128x128xbf16, #tpu.memory_space<vmem>>, %arg5: memref<1x128xf32, #tpu.memory_space<vmem>>, %arg6: memref<128x128xbf16, #tpu.memory_space<vmem>>, %arg7: memref<1x128xf32, #tpu.memory_space<vmem>>, %arg8: memref<2x128xf32, #tpu.memory_space<vmem>>, %arg9: memref<2x128xf32, #tpu.memory_space<vmem>>) attributes {dimension_semantics = [#tpu.dimension_semantics<arbitrary>], iteration_bounds = array<i64: 1>, scalar_prefetch = 0 : i64, scratch_operands = 1 : i64, tpu.core_type = #tpu.core_type<tc>, window_params = [{transform_indices = @transform_0, window_bounds = array<i64: 2, 128>}, {transform_indices = @transform_1, window_bounds = array<i64: 128, 128>}, {pipeline_mode = #tpu.pipeline_mode<synchronous>, transform_indices = @transform_2, window_bounds = array<i64: 1, 128>}, {pipeline_mode = #tpu.pipeline_mode<synchronous>, transform_indices = @transform_3, window_bounds = array<i64: 128, 128>}, {pipeline_mode = #tpu.pipeline_mode<synchronous>, transform_indices = @transform_4, window_bounds = array<i64: 1, 128>}, {pipeline_mode = #tpu.pipeline_mode<synchronous>, transform_indices = @transform_5, window_bounds = array<i64: 128, 128>}, {pipeline_mode = #tpu.pipeline_mode<synchronous>, transform_indices = @transform_6, window_bounds = array<i64: 1, 128>}, {pipeline_mode = #tpu.pipeline_mode<synchronous>, transform_indices = @transform_7, window_bounds = array<i64: 2, 128>}]} {
    %c0_i32 = arith.constant 0 : i32
    %0 = arith.cmpi eq, %arg0, %c0_i32 : i32
    %1 = arith.extui %0 : i1 to i32
    %c0_i32_0 = arith.constant 0 : i32
    %2 = arith.cmpi ne, %1, %c0_i32_0 : i32
    scf.if %2 {
      %cst_10 = arith.constant 0.000000e+00 : f32
      %12 = vector.broadcast %cst_10 : f32 to vector<2x128xf32>
      %c0_11 = arith.constant 0 : index
      %c0_12 = arith.constant 0 : index
      %13 = vector.load %arg9[%c0_11, %c0_12] : memref<2x128xf32, #tpu.memory_space<vmem>>, vector<2x128xf32>
      tpu.vector_store %arg9[%c0_11, %c0_12], %12 {strides = array<i32>} : memref<2x128xf32, #tpu.memory_space<vmem>>, vector<2x128xf32>,
    } else {
    }
    %c0 = arith.constant 0 : index
    %c0_1 = arith.constant 0 : index
    %3 = vector.load %arg9[%c0, %c0_1] : memref<2x128xf32, #tpu.memory_space<vmem>>, vector<2x128xf32>
    %c0_2 = arith.constant 0 : index
    %c0_3 = arith.constant 0 : index
    %4 = vector.load %arg1[%c0_2, %c0_3] : memref<2x128xbf16, #tpu.memory_space<vmem>>, vector<2x128xbf16>
    %c0_4 = arith.constant 0 : index
    %c0_5 = arith.constant 0 : index
    %5 = vector.load %arg2[%c0_4, %c0_5] : memref<128x128xbf16, #tpu.memory_space<vmem>>, vector<128x128xbf16>
    %cst = arith.constant dense<0.000000e+00> : vector<2x128xf32>
    %6 = tpu.matmul %4, %5, %cst {dimension_numbers = #tpu.dot_dimension_numbers<[1], [0], [0], [1], [0, 0, 1, 1], [], []>} : vector<2x128xbf16>, vector<128x128xbf16>, vector<2x128xf32> -> vector<2x128xf32>
    %7 = arith.addf %3, %6 : vector<2x128xf32>
    %c0_6 = arith.constant 0 : index
    %c0_7 = arith.constant 0 : index
    %8 = vector.load %arg9[%c0_6, %c0_7] : memref<2x128xf32, #tpu.memory_space<vmem>>, vector<2x128xf32>
    tpu.vector_store %arg9[%c0_6, %c0_7], %7 {strides = array<i32>} : memref<2x128xf32, #tpu.memory_space<vmem>>, vector<2x128xf32>,
    %c0_i32_8 = arith.constant 0 : i32
    %9 = arith.cmpi eq, %arg0, %c0_i32_8 : i32
    %10 = arith.extui %9 : i1 to i32
    %c0_i32_9 = arith.constant 0 : i32
    %11 = arith.cmpi ne, %10, %c0_i32_9 : i32
    scf.if %11 {
      %c0_10 = arith.constant 0 : index
      %c0_11 = arith.constant 0 : index
      %12 = vector.load %arg9[%c0_10, %c0_11] : memref<2x128xf32, #tpu.memory_space<vmem>>, vector<2x128xf32>
      %c0_12 = arith.constant 0 : index
      %c0_13 = arith.constant 0 : index
      %13 = vector.load %arg3[%c0_12, %c0_13] : memref<1x128xf32, #tpu.memory_space<vmem>>, vector<1x128xf32>
      %14 = vector.broadcast %13 : vector<1x128xf32> to vector<2x128xf32>
      %15 = arith.addf %12, %14 : vector<2x128xf32>
      %cst_14 = arith.constant 0.000000e+00 : f32
      %16 = vector.broadcast %cst_14 : f32 to vector<2x128xf32>
      %17 = arith.maximumf %15, %16 : vector<2x128xf32>
      %18 = arith.truncf %17 : vector<2x128xf32> to vector<2x128xbf16>
      %c0_15 = arith.constant 0 : index
      %c0_16 = arith.constant 0 : index
      %19 = vector.load %arg4[%c0_15, %c0_16] : memref<128x128xbf16, #tpu.memory_space<vmem>>, vector<128x128xbf16>
      %cst_17 = arith.constant dense<0.000000e+00> : vector<2x128xf32>
      %20 = tpu.matmul %18, %19, %cst_17 {dimension_numbers = #tpu.dot_dimension_numbers<[1], [0], [0], [1], [0, 0, 1, 1], [], []>} : vector<2x128xbf16>, vector<128x128xbf16>, vector<2x128xf32> -> vector<2x128xf32>
      %c0_18 = arith.constant 0 : index
      %c0_19 = arith.constant 0 : index
      %21 = vector.load %arg5[%c0_18, %c0_19] : memref<1x128xf32, #tpu.memory_space<vmem>>, vector<1x128xf32>
      %22 = vector.broadcast %21 : vector<1x128xf32> to vector<2x128xf32>
      %23 = arith.addf %20, %22 : vector<2x128xf32>
      %cst_20 = arith.constant 0.000000e+00 : f32
      %24 = vector.broadcast %cst_20 : f32 to vector<2x128xf32>
      %25 = arith.maximumf %23, %24 : vector<2x128xf32>
      %26 = arith.truncf %25 : vector<2x128xf32> to vector<2x128xbf16>
      %c0_21 = arith.constant 0 : index
      %c0_22 = arith.constant 0 : index
      %27 = vector.load %arg6[%c0_21, %c0_22] : memref<128x128xbf16, #tpu.memory_space<vmem>>, vector<128x128xbf16>
      %cst_23 = arith.constant dense<0.000000e+00> : vector<2x128xf32>
      %28 = tpu.matmul %26, %27, %cst_23 {dimension_numbers = #tpu.dot_dimension_numbers<[1], [0], [0], [1], [0, 0, 1, 1], [], []>} : vector<2x128xbf16>, vector<128x128xbf16>, vector<2x128xf32> -> vector<2x128xf32>
      %c0_24 = arith.constant 0 : index
      %c0_25 = arith.constant 0 : index
      %29 = vector.load %arg7[%c0_24, %c0_25] : memref<1x128xf32, #tpu.memory_space<vmem>>, vector<1x128xf32>
      %30 = vector.broadcast %29 : vector<1x128xf32> to vector<2x128xf32>
      %31 = arith.addf %28, %30 : vector<2x128xf32>
      %c0_26 = arith.constant 0 : index
      %c0_27 = arith.constant 0 : index
      %32 = vector.load %arg8[%c0_26, %c0_27] : memref<2x128xf32, #tpu.memory_space<vmem>>, vector<2x128xf32>
      tpu.vector_store %arg8[%c0_26, %c0_27], %31 {strides = array<i32>} : memref<2x128xf32, #tpu.memory_space<vmem>>, vector<2x128xf32>,
    } else {
    }
    return
  }
  func.func @transform_0(%arg0: i32) -> (i32, i32) {
    %c0_i32 = arith.constant 0 : i32
    %c0_i32_0 = arith.constant 0 : i32
    return %c0_i32, %arg0 : i32, i32
  }
  func.func @transform_1(%arg0: i32) -> (i32, i32) {
    %c0_i32 = arith.constant 0 : i32
    %c0_i32_0 = arith.constant 0 : i32
    return %arg0, %c0_i32 : i32, i32
  }
  func.func @transform_2(%arg0: i32) -> (i32, i32) {
    %c0_i32 = arith.constant 0 : i32
    %c0_i32_0 = arith.constant 0 : i32
    %c0_i32_1 = arith.constant 0 : i32
    return %c0_i32, %c0_i32_0 : i32, i32
  }
  func.func @transform_3(%arg0: i32) -> (i32, i32) {
    %c0_i32 = arith.constant 0 : i32
    %c0_i32_0 = arith.constant 0 : i32
    %c0_i32_1 = arith.constant 0 : i32
    return %c0_i32, %c0_i32_0 : i32, i32
  }
  func.func @transform_4(%arg0: i32) -> (i32, i32) {
    %c0_i32 = arith.constant 0 : i32
    %c0_i32_0 = arith.constant 0 : i32
    %c0_i32_1 = arith.constant 0 : i32
    return %c0_i32, %c0_i32_0 : i32, i32
  }
  func.func @transform_5(%arg0: i32) -> (i32, i32) {
    %c0_i32 = arith.constant 0 : i32
    %c0_i32_0 = arith.constant 0 : i32
    %c0_i32_1 = arith.constant 0 : i32
    return %c0_i32, %c0_i32_0 : i32, i32
  }
  func.func @transform_6(%arg0: i32) -> (i32, i32) {
    %c0_i32 = arith.constant 0 : i32
    %c0_i32_0 = arith.constant 0 : i32
    %c0_i32_1 = arith.constant 0 : i32
    return %c0_i32, %c0_i32_0 : i32, i32
  }
  func.func @transform_7(%arg0: i32) -> (i32, i32) {
    %c0_i32 = arith.constant 0 : i32
    %c0_i32_0 = arith.constant 0 : i32
    %c0_i32_1 = arith.constant 0 : i32
    return %c0_i32, %c0_i32_0 : i32, i32
  }
}

</mosaic_0001>

<bundles_post_ra>
// kernel: muse_supervised.1
= control target key start
LH: loop header
LB: loop body
LE: loop exit
PB: predicated region body
PF: predicated region fallthrough
CT: control target
= control target key end

     0   :  { %12 = vsyncpa [#allocation4], 0  ;;  %s786_s0 = inlined_call_operand.vmem [shape: bf16[2,128], index: 0, kind: input, shape index: {}]   ;;  %s787_s1 = inlined_call_operand.hbm [shape: bf16[128,128], index: 1, kind: input, shape index: {}]   ;;  %s788_s2 = inlined_call_operand.vmem [shape: f32[1,128], index: 2, kind: input, shape index: {}]   ;;  %s789_s3 = inlined_call_operand.hbm [shape: bf16[128,128], index: 3, kind: input, shape index: {}]   ;;  %s790_s4 = inlined_call_operand.vmem [shape: f32[1,128], index: 4, kind: input, shape index: {}]   ;;  %s791_s5 = inlined_call_operand.hbm [shape: bf16[128,128], index: 5, kind: input, shape index: {}]   ;;  %s792_s6 = inlined_call_operand.vmem [shape: f32[1,128], index: 6, kind: input, shape index: {}]   ;;  %s793_s7 = inlined_call_operand.vmem [shape: f32[2,128], index: 7, kind: output, shape index: {}]  }
   0x1   :  { %13 = vsyncpa [#allocation6], 0  ;;  %s641_s24 = smov [#allocation5]   ;;  %s642_s26 = smov [#allocation3]  }
   0x2   :  { %s35_s25 = sshll.u32 %s641_s24, 4  ;;  %s21_s27 = sshll.u32 %s642_s26, 4  ;;  %s36_s25 = int_to_ptr.vmem [resolvable:$true] %s35_s25  ;;  %s688_s27 = int_to_ptr.vmem [resolvable:$true] %s21_s27 }
   0x3   :  { %s571_s30 = scalar_lea.hbm %s789_s3, 1024 }
   0x4   :  { %p572_p0 = scmp.ne.s32.totalorder %s789_s3, %s571_s30  ;;  %p575_p1 = scmp.lt.u32.totalorder %s571_s30, %s789_s3 }
   0x6   :  { %p577_p2 = pnand %p575_p1, %p572_p0 }
   0x8   :  { %580 = shalt.err (!%p577_p2)
}
   0x9   :  { %s581_s12 = scalar_lea.vmem %s36_s25, 1024  ;;  %p586_p4 = scmp.lt.s32.totalorder %s36_s25, %s36_s25 }
   0xa   :  { %p582_p3 = scmp.ne.s32.totalorder %s36_s25, %s581_s12  ;;  %p587_p5 = scmp.lt.s32.totalorder %s581_s12, %s581_s12 }
   0xc   :  { %p588_p6 = por %p587_p5, %p586_p4 }
   0xe   :  { %p589_p7 = pnand %p588_p6, %p582_p3 }
  0x10   :  { %592 = shalt.err (!%p589_p7)
}
  0x11   :  { %s643_s13 = smov 64   ;;  %s644_s14 = smov 4  }
  0x12   :  { %41 = dma.hbm_to_vmem [thread:$0]  %s789_s3, 1024, %s36_s25, [#allocation6], %s643_s13, %s643_s13, %s644_s14  }
  0x13   :  { %s593_s19 = scalar_lea.hbm %s787_s1, 1024 }
  0x14   :  { %p594_p8 = scmp.ne.s32.totalorder %s787_s1, %s593_s19  ;;  %p597_p9 = scmp.lt.u32.totalorder %s593_s19, %s787_s1 }
  0x16   :  { %p599_p10 = pnand %p597_p9, %p594_p8 }
  0x18   :  { %602 = shalt.err (!%p599_p10)
}
  0x19   :  { %s603_s24 = scalar_lea.vmem %s688_s27, 1024  ;;  %p608_p12 = scmp.lt.s32.totalorder %s688_s27, %s688_s27 }
  0x1a   :  { %p604_p11 = scmp.ne.s32.totalorder %s688_s27, %s603_s24  ;;  %p609_p13 = scmp.lt.s32.totalorder %s603_s24, %s603_s24 }
  0x1c   :  { %p610_p0 = por %p609_p13, %p608_p12 }
  0x1e   :  { %p611_p1 = pnand %p610_p0, %p604_p11 }
  0x20   :  { %614 = shalt.err (!%p611_p1)
}
  0x21   :  { %27 = dma.hbm_to_vmem [thread:$0]  %s787_s1, 1024, %s688_s27, [#allocation4], %s643_s13, %s643_s13, %s644_s14  }
  0x22   :  { %s645_s26 = smov [#allocation7]   ;;  %s615_s8 = scalar_lea.hbm %s791_s5, 1024 }
  0x23   :  { %s49_s28 = sshll.u32 %s645_s26, 4  ;;  %p616_p2 = scmp.ne.s32.totalorder %s791_s5, %s615_s8  ;;  %s50_s28 = int_to_ptr.vmem [resolvable:$true] %s49_s28 }
  0x24   :  { %p619_p3 = scmp.lt.u32.totalorder %s615_s8, %s791_s5 }
  0x26   :  { %p621_p4 = pnand %p619_p3, %p616_p2 }
  0x28   :  { %624 = shalt.err (!%p621_p4)
}
  0x29   :  { %s625_s15 = scalar_lea.vmem %s50_s28, 1024  ;;  %p630_p6 = scmp.lt.s32.totalorder %s50_s28, %s50_s28 }
  0x2a   :  { %p626_p5 = scmp.ne.s32.totalorder %s50_s28, %s625_s15  ;;  %p631_p7 = scmp.lt.s32.totalorder %s625_s15, %s625_s15 }
  0x2c   :  { %p632_p8 = por %p631_p7, %p630_p6 }
  0x2e   :  { %p633_p9 = pnand %p632_p8, %p626_p5 }
  0x30   :  { %636 = shalt.err (!%p633_p9)
}
  0x31   :  { %55 = dma.hbm_to_vmem [thread:$0]  %s791_s5, 1024, %s50_s28, [#allocation6], %s643_s13, %s643_s13, %s644_s14  }
  0x32   :  { %637 = dma.done.wait [#allocation4], 1024  }
  0x33   :  { %638 = vsyncadd [#allocation4], 4294966272 }
  0x34   :  { %639 = dma.done.wait [#allocation6], 2048  }
  0x35   :  { %640 = vsyncadd [#allocation6], 4294965248  ;;  %v646_v0 = vmov 0.0   ;;  %vm647_vm0 = vmmov 0   ;;  %v547_v1 = vld [vmem:[#allocation3] sm:$0xff]   ;;  %v548_v2 = vld [vmem:[#allocation3 + $0x8] sm:$0xff]  }
  0x36   :  { %480 = vmatprep.subr.bf16.mxu0 %v646_v0  ;;  %72 = vst [vmem:[#allocation2] sm:$0x3] %v646_v0  ;;  %496 = vmatprep.mubr.msk.bf16.mxu0 %vm647_vm0, %v646_v0  ;;  %v549_v3 = vld [vmem:[#allocation3 + $0x10] sm:$0xff]   ;;  %v555_v4 = vld [vmem:[#allocation5] sm:$0xff]   ;;  %v550_v5 = vld [vmem:[#allocation3 + $0x18] sm:$0xff]  }
  0x37   :  { %500 = vmatprep.subr.bf16.mxu1 %v646_v0  ;;  %516 = vmatprep.mubr.msk.bf16.mxu1 %vm647_vm0, %v646_v0  ;;  %v556_v6 = vld [vmem:[#allocation5 + $0x8] sm:$0xff]   ;;  %v551_v7 = vld [vmem:[#allocation3 + $0x20] sm:$0xff]   ;;  %v557_v8 = vld [vmem:[#allocation5 + $0x10] sm:$0xff]  }
  0x38   :  { %481 = vmatpush3.bf16.msra.mxu0 %v547_v1  ;;  %501 = vmatpush3.bf16.msra.mxu1 %v555_v4  ;;  %v552_v9 = vld [vmem:[#allocation3 + $0x28] sm:$0xff]   ;;  %v558_v10 = vld [vmem:[#allocation5 + $0x18] sm:$0xff]   ;;  %v553_v11 = vld [vmem:[#allocation3 + $0x30] sm:$0xff]  }
  0x39   :  { %482 = vmatprep.subr.bf16.mxu0 %v646_v0  ;;  %502 = vmatprep.subr.bf16.mxu1 %v646_v0  ;;  %v554_v12 = vld [vmem:[#allocation3 + $0x38] sm:$0xff]   ;;  %v559_v14 = vld [vmem:[#allocation5 + $0x20] sm:$0xff]   ;;  %v560_v15 = vld [vmem:[#allocation5 + $0x28] sm:$0xff]  }
  0x3a   :  { %v74_v13 = vld [vmem:[%s786_s0] sm:$0x1]  ;;  %v561_v16 = vld [vmem:[#allocation5 + $0x30] sm:$0xff]   ;;  %v563_v18 = vld [vmem:[#allocation7] sm:$0xff]  }
  0x3b   :  { %v562_v17 = vld [vmem:[#allocation5 + $0x38] sm:$0xff]   ;;  %v564_v19 = vld [vmem:[#allocation7 + $0x8] sm:$0xff]   ;;  %v565_v20 = vld [vmem:[#allocation7 + $0x10] sm:$0xff]  }
  0x3c   :  { %483 = vmatpush3.bf16.msra.mxu0 %v548_v2  ;;  %503 = vmatpush3.bf16.msra.mxu1 %v556_v6  ;;  %v566_v21 = vld [vmem:[#allocation7 + $0x18] sm:$0xff]   ;;  %v567_v22 = vld [vmem:[#allocation7 + $0x20] sm:$0xff]   ;;  %v568_v23 = vld [vmem:[#allocation7 + $0x28] sm:$0xff]  }
  0x3d   :  { %484 = vmatprep.subr.bf16.mxu0 %v646_v0  ;;  %504 = vmatprep.subr.bf16.mxu1 %v646_v0  ;;  %v73_v24 = vld [vmem:[#allocation2] sm:$0x3]  ;;  %v569_v35 = vld [vmem:[#allocation7 + $0x30] sm:$0xff]  }
  0x3e   :  { %v434_v30 = vld [vmem:[%s788_s2] ss:$0 sm:$0xff] }
  0x3f   :  { %v570_v36 = vld [vmem:[#allocation7 + $0x38] sm:$0xff]  }
  0x40   :  { %485 = vmatpush3.bf16.msra.mxu0 %v549_v3  ;;  %505 = vmatpush3.bf16.msra.mxu1 %v557_v8  ;;  %v435_v37 = vld [vmem:[%s790_s4] ss:$0 sm:$0xff] }
  0x41   :  { %486 = vmatprep.subr.bf16.mxu0 %v646_v0  ;;  %506 = vmatprep.subr.bf16.mxu1 %v646_v0  ;;  %v444_v45 = vld [vmem:[%s792_s6] ss:$0 sm:$0xff] }
  0x44   :  { %487 = vmatpush3.bf16.msra.mxu0 %v550_v5  ;;  %507 = vmatpush3.bf16.msra.mxu1 %v558_v10 }
  0x45   :  { %488 = vmatprep.subr.bf16.mxu0 %v646_v0  ;;  %508 = vmatprep.subr.bf16.mxu1 %v646_v0 }
  0x48   :  { %489 = vmatpush3.bf16.msra.mxu0 %v551_v7  ;;  %509 = vmatpush3.bf16.msra.mxu1 %v559_v14 }
  0x49   :  { %490 = vmatprep.subr.bf16.mxu0 %v646_v0  ;;  %510 = vmatprep.subr.bf16.mxu1 %v646_v0 }
  0x4c   :  { %491 = vmatpush3.bf16.msra.mxu0 %v552_v9  ;;  %511 = vmatpush3.bf16.msra.mxu1 %v560_v15 }
  0x4d   :  { %492 = vmatprep.subr.bf16.mxu0 %v646_v0  ;;  %512 = vmatprep.subr.bf16.mxu1 %v646_v0 }
  0x50   :  { %493 = vmatpush3.bf16.msra.mxu0 %v553_v11  ;;  %513 = vmatpush3.bf16.msra.mxu1 %v561_v16 }
  0x51   :  { %494 = vmatprep.subr.bf16.mxu0 %v646_v0  ;;  %514 = vmatprep.subr.bf16.mxu1 %v646_v0 }
  0x54   :  { %495 = vmatpush3.bf16.msra.mxu0 %v554_v12  ;;  %515 = vmatpush3.bf16.msra.mxu1 %v562_v17 }
  0x55   :  { %520 = vmatprep.subr.bf16.mxu0 %v646_v0 }
  0x57   :  { %497 = vmatmul.mubr.bf16.vlgmr.msra.gmra.mrb[0].mxu0 %v74_v13 }
  0x58   :  { %536 = vmatprep.mubr.msk.bf16.mxu0 %vm647_vm0, %v646_v0  ;;  %521 = vmatpush3.bf16.msra.mxu0 %v563_v18 }
  0x59   :  { %522 = vmatprep.subr.bf16.mxu0 %v646_v0 }
  0x5c   :  { %523 = vmatpush3.bf16.msra.mxu0 %v564_v19 }
  0x5d   :  { %524 = vmatprep.subr.bf16.mxu0 %v646_v0 }
  0x60   :  { %525 = vmatpush3.bf16.msra.mxu0 %v565_v20 }
  0x61   :  { %526 = vmatprep.subr.bf16.mxu0 %v646_v0 }
  0x64   :  { %527 = vmatpush3.bf16.msra.mxu0 %v566_v21 }
  0x65   :  { %528 = vmatprep.subr.bf16.mxu0 %v646_v0 }
  0x68   :  { %529 = vmatpush3.bf16.msra.mxu0 %v567_v22 }
  0x69   :  { %530 = vmatprep.subr.bf16.mxu0 %v646_v0 }
  0x6c   :  { %531 = vmatpush3.bf16.msra.mxu0 %v568_v23 }
  0x6d   :  { %532 = vmatprep.subr.bf16.mxu0 %v646_v0 }
  0x70   :  { %533 = vmatpush3.bf16.msra.mxu0 %v569_v35 }
  0x71   :  { %534 = vmatprep.subr.bf16.mxu0 %v646_v0 }
  0x74   :  { %535 = vmatpush3.bf16.msra.mxu0 %v570_v36 }
 0x12a   :  { %v173_v25 = vpop.f32.mrb[0].mxu0 }
 0x12b   :  { %v179_v26 = vadd.f32 %v173_v25, %v73_v24  ;;  %v498_v27 = vpop.f32.mrb[1].mxu0 }
 0x12c   :  { %v176_v28 = vpop.f32.mrb[2].mxu0 }
 0x12d   :  { %180 = vst [vmem:[#allocation2] sm:$0x3] %v179_v26  ;;  %v499_v29 = vpop.f32.mrb[3].mxu0 }
 0x134   :  { %v184_v31 = vld [vmem:[#allocation2] sm:$0x3] }
 0x135   :  { %v192_v32 = vadd.f32 %v434_v30, %v184_v31 }
 0x137   :  { %v193_v33 = vmax.f32 %v192_v32, 0.0 }
 0x139   :  { %v194_v34 = vpack.c.bf16 %v193_v33, %v193_v33 }
 0x13b   :  { %517 = vmatmul.mubr.bf16.vlgmr.msra.gmra.mrb[0].mxu1 %v194_v34 }
 0x20e   :  { %v300_v38 = vpop.f32.mrb[0].mxu1 }
 0x20f   :  { %v301_v39 = vadd.f32 %v435_v37, %v300_v38  ;;  %v518_v40 = vpop.f32.mrb[1].mxu1 }
 0x210   :  { %v303_v41 = vpop.f32.mrb[2].mxu1 }
 0x211   :  { %v306_v42 = vmax.f32 %v301_v39, 0.0  ;;  %v519_v43 = vpop.f32.mrb[3].mxu1 }
 0x213   :  { %v307_v44 = vpack.c.bf16 %v306_v42, %v306_v42 }
 0x215   :  { %537 = vmatmul.mubr.bf16.vlgmr.msra.gmra.mrb[4].mxu0 %v307_v44 }
 0x2e8   :  { %v413_v46 = vpop.f32.mrb[4].mxu0 }
 0x2e9   :  { %v414_v47 = vadd.f32 %v444_v45, %v413_v46  ;;  %v538_v48 = vpop.f32.mrb[5].mxu0 }
 0x2ea   :  { %v416_v49 = vpop.f32.mrb[6].mxu0 }
 0x2eb   :  { %419 = vst [vmem:[%s793_s7] sm:$0x3] %v414_v47  ;;  %v539_v50 = vpop.f32.mrb[7].mxu0 }
 0x2ec   :  { %424 = vsyncpa [#allocation4], 1 }
 0x2ed   :  { %425 = vsyncpa [#allocation6], 1 }

</bundles_post_ra>
